<compile_context>
chip_gen: v6e
topology: v6e:2x2x1
jax: 0.10.0
libtpu: 0.0.40
codegen_flags: <defaults>
</compile_context>

<pallas_src>
import math

import jax
import jax.numpy as jnp
from jax.experimental import pallas as pl
from jax.experimental.pallas import tpu as pltpu


def _round_up(v, m):
    return ((v + m - 1) // m) * m


def _vmem_capacity_bytes():
    try:
        return int(pltpu.get_tpu_info().vmem_capacity_bytes)
    except Exception:
        return 64 * 1024 * 1024  # conservative: v7x per-TensorCore VMEM


def _pick_tn(f_out):
    """Column tile from {128, 256, 512} minimizing F_out padding waste."""
    best_tn, best_pad = 128, _round_up(f_out, 128) - f_out
    for cand in (256, 512):
        pad = _round_up(f_out, cand) - f_out
        if pad <= best_pad:  # prefer the bigger tile when padding is no worse
            best_tn, best_pad = cand, pad
    return best_tn


# ----------------------------------------------------------------------------
# Fused single-kernel path (small / medium graphs)
# ----------------------------------------------------------------------------
def _make_fused_kernel(compute_dtype, has_bias):
    def _impl(x_ref, w_ref, a_ref, bias_ref, o_ref, support_ref):
        # support = x @ w computed once, kept resident in VMEM for all row panels.
        @pl.when(pl.program_id(0) == 0)
        def _():
            s = jnp.dot(x_ref[...].astype(compute_dtype),
                        w_ref[...].astype(compute_dtype),
                        preferred_element_type=jnp.float32)
            support_ref[...] = s.astype(support_ref.dtype)

        out = jnp.dot(a_ref[...].astype(compute_dtype), support_ref[...],
                      preferred_element_type=jnp.float32)
        if has_bias:
            out = out + bias_ref[...]
        o_ref[...] = out.astype(o_ref.dtype)

    if has_bias:
        def kernel(x_ref, w_ref, a_ref, bias_ref, o_ref, support_ref):
            _impl(x_ref, w_ref, a_ref, bias_ref, o_ref, support_ref)
    else:
        def kernel(x_ref, w_ref, a_ref, o_ref, support_ref):
            _impl(x_ref, w_ref, a_ref, None, o_ref, support_ref)
    return kernel


def _fused_gcn(x, adj, weight, bias, compute_dtype, tm, vmem_limit):
    n, f_in = x.shape
    f_out = weight.shape[1]
    has_bias = bias is not None

    in_specs = [
        pl.BlockSpec((n, f_in), lambda i: (0, 0)),      # x   (DMA'd once; index const)
        pl.BlockSpec((f_in, f_out), lambda i: (0, 0)),  # w   (DMA'd once; index const)
        pl.BlockSpec((tm, n), lambda i: (i, 0)),        # adj row panel, f32 in HBM
    ]
    operands = [x, weight, adj]
    if has_bias:
        in_specs.append(pl.BlockSpec((1, f_out), lambda i: (0, 0)))
        operands.append(bias.astype(jnp.float32).reshape(1, f_out))

    return pl.pallas_call(
        _make_fused_kernel(compute_dtype, has_bias),
        out_shape=jax.ShapeDtypeStruct((n, f_out), jnp.float32),
        grid_spec=pltpu.PrefetchScalarGridSpec(
            num_scalar_prefetch=0,
            grid=(pl.cdiv(n, tm),),
            in_specs=in_specs,
            out_specs=pl.BlockSpec((tm, f_out), lambda i: (i, 0)),
            scratch_shapes=[pltpu.VMEM((n, f_out), compute_dtype)],
        ),
        compiler_params=pltpu.CompilerParams(
            # support scratch is carried across the row-panel loop -> arbitrary.
            dimension_semantics=("arbitrary",),
            vmem_limit_bytes=vmem_limit,
        ),
    )(*operands)


# ----------------------------------------------------------------------------
# Tiled two-matmul path (large graphs)
# ----------------------------------------------------------------------------
def _make_support_kernel(compute_dtype):
    """support = x_pad @ w_pad : bf16 output, f32 VMEM accumulator."""
    def kernel(a_ref, b_ref, o_ref, acc_ref):
        k = pl.program_id(2)

        @pl.when(k == 0)
        def _():
            acc_ref[...] = jnp.zeros_like(acc_ref)

        acc_ref[...] += jnp.dot(a_ref[...].astype(compute_dtype),
                                b_ref[...].astype(compute_dtype),
                                preferred_element_type=jnp.float32)

        @pl.when(k == pl.num_programs(2) - 1)
        def _():
            o_ref[...] = acc_ref[...].astype(o_ref.dtype)
    return kernel


def _make_adj_matmul_kernel(compute_dtype, rem, has_bias):
    """out = adj @ support (+ bias): adj cast per-tile, f32 output block is the
    accumulator (resident across k).  `rem` is the number of valid adj columns
    in the last k block (0 => no masking needed at all)."""
    def _impl(a_ref, b_ref, bias_ref, o_ref):
        k = pl.program_id(2)
        nk = pl.num_programs(2)

        @pl.when(k == 0)
        def _():
            o_ref[...] = jnp.zeros_like(o_ref)

        def _accum(a_tile):
            o_ref[...] += jnp.dot(a_tile, b_ref[...],
                                  preferred_element_type=jnp.float32)

        if rem == 0:
            _accum(a_ref[...].astype(compute_dtype))
        else:
            @pl.when(k < nk - 1)
            def _():
                _accum(a_ref[...].astype(compute_dtype))

            @pl.when(k == nk - 1)
            def _():
                a = a_ref[...].astype(compute_dtype)
                col = jax.lax.broadcasted_iota(jnp.int32, a.shape, 1)
                _accum(jnp.where(col < rem, a, jnp.zeros_like(a)))

        if has_bias:
            @pl.when(k == nk - 1)
            def _():
                o_ref[...] += bias_ref[...]

    if has_bias:
        def kernel(a_ref, b_ref, bias_ref, o_ref):
            _impl(a_ref, b_ref, bias_ref, o_ref)
    else:
        def kernel(a_ref, b_ref, o_ref):
            _impl(a_ref, b_ref, None, o_ref)
    return kernel


def _tiled_gcn(x, adj, weight, bias, compute_dtype):
    n, f_in = x.shape
    f_out = weight.shape[1]
    has_bias = bias is not None

    vmem = _vmem_capacity_bytes()
    big_vmem = vmem > 96 * 1024 * 1024          # v5e/v6e (128 MiB) vs v7x (64 MiB/TC)
    vmem_limit = max(32 * 1024 * 1024,
                     min(vmem * 3 // 4, 96 * 1024 * 1024))

    # ----- output-column tile (shared by both matmuls) -----
    tn = _pick_tn(f_out)
    f_out_pad = _round_up(f_out, tn)

    # ----- second matmul (adj @ support): dominant cost -----
    tm2 = 1024 if big_vmem else 512
    tk2 = 2048 if big_vmem else 1024
    if f_out_pad <= tn:          # single j tile -> grow the row tile preferentially
        tm2 *= 2
    tm2 = min(tm2, _round_up(n, 128))
    tk2 = min(tk2, _round_up(n, 128))
    # keep >= 2 output tiles so ("parallel","parallel") can shard across 2 TCs (v7x)
    while pl.cdiv(n, tm2) * (f_out_pad // tn) < 2 and tm2 > 128:
        tm2 //= 2

    n_pad_k = _round_up(n, tk2)  # support rows padded to the contraction tile
    rem = n % tk2                # valid adj columns in the last k block

    # ----- first matmul (x @ w) -----
    tk1 = min(2048 if big_vmem else 1024, _round_up(f_in, 128))
    tm1 = min(1024 if big_vmem else 512, _round_up(n_pad_k, 128))
    f_in_pad = _round_up(f_in, tk1)

    # x / weight are small relative to adj: pad once in the wrapper.  Zero rows of
    # x make support rows [n, n_pad_k) exactly zero, so the masked adj columns in
    # the second matmul contract against true zeros.
    x_p = jnp.pad(x, ((0, n_pad_k - n), (0, f_in_pad - f_in)))
    w_p = jnp.pad(weight, ((0, f_in_pad - f_in), (0, f_out_pad - f_out)))

    support = pl.pallas_call(
        _make_support_kernel(compute_dtype),
        out_shape=jax.ShapeDtypeStruct((n_pad_k, f_out_pad), compute_dtype),
        grid_spec=pltpu.PrefetchScalarGridSpec(
            num_scalar_prefetch=0,
            grid=(pl.cdiv(n_pad_k, tm1), f_out_pad // tn, f_in_pad // tk1),
            in_specs=[
                pl.BlockSpec((tm1, tk1), lambda i, j, k: (i, k)),
                pl.BlockSpec((tk1, tn), lambda i, j, k: (k, j)),
            ],
            out_specs=pl.BlockSpec((tm1, tn), lambda i, j, k: (i, j)),
            scratch_shapes=[pltpu.VMEM((tm1, tn), jnp.float32)],
        ),
        compiler_params=pltpu.CompilerParams(
            dimension_semantics=("parallel", "parallel", "arbitrary"),
            vmem_limit_bytes=vmem_limit,
        ),
    )(x_p, w_p)

    # adj passed as stored (no wrapper astype / pad); support stays padded bf16.
    in_specs = [
        pl.BlockSpec((tm2, tk2), lambda i, j, k: (i, k)),   # adj (f32 in HBM)
        pl.BlockSpec((tk2, tn), lambda i, j, k: (k, j)),    # support (compute dtype)
    ]
    operands = [adj, support]
    if has_bias:
        bias_p = jnp.pad(bias.astype(jnp.float32),
                         (0, f_out_pad - f_out)).reshape(1, f_out_pad)
        in_specs.append(pl.BlockSpec((1, tn), lambda i, j, k: (0, j)))
        operands.append(bias_p)

    out = pl.pallas_call(
        _make_adj_matmul_kernel(compute_dtype, rem, has_bias),
        out_shape=jax.ShapeDtypeStruct((n, f_out_pad), jnp.float32),
        grid_spec=pltpu.PrefetchScalarGridSpec(
            num_scalar_prefetch=0,
            grid=(pl.cdiv(n, tm2), f_out_pad // tn, n_pad_k // tk2),
            in_specs=in_specs,
            out_specs=pl.BlockSpec((tm2, tn), lambda i, j, k: (i, j)),
        ),
        compiler_params=pltpu.CompilerParams(
            dimension_semantics=("parallel", "parallel", "arbitrary"),
            vmem_limit_bytes=vmem_limit,
        ),
    )(*operands)

    if f_out_pad != f_out:
        out = out[:, :f_out]
    return out


# ----------------------------------------------------------------------------
# Public forward
# ----------------------------------------------------------------------------
_FUSED_VMEM_BUDGET = 28 * 1024 * 1024
_FUSED_VMEM_LIMIT = 40 * 1024 * 1024


def graph_convolution(x, adj, weight, bias=None, *,
                      compute_dtype=jnp.bfloat16, force_tiled=False):
    """Pallas implementation of GraphConvolution.forward.

    x:      [N, F_in]   float32
    adj:    [N, N]      float32 (dense; torch.spmm semantics on a dense adj)
    weight: [F_in, F_out]
    bias:   [F_out] or None
    returns [N, F_out]  float32

    compute_dtype=bfloat16 quantizes the matmul operands (f32 accumulation);
    pass compute_dtype=jnp.float32 for strict parity with the torch reference.
    """
    n, f_in = x.shape
    assert weight.shape[0] == f_in and adj.shape == (n, n)
    f_out = weight.shape[1]

    if not force_tiled:
        # Fused single-kernel path when everything fits comfortably in VMEM.
        tm_f = _round_up(n, 16) if n <= 1024 else 512
        itemsize = jnp.dtype(compute_dtype).itemsize
        fused_bytes = (2 * n * f_in * 4 + 2 * f_in * f_out * 4
                       + 2 * tm_f * n * 4        # adj row panel (double-buffered)
                       + 2 * tm_f * f_out * 4    # output panel
                       + n * f_out * itemsize    # resident support scratch
                       + 2 * f_out * 4)          # bias
        if fused_bytes <= _FUSED_VMEM_BUDGET:
            return _fused_gcn(x, adj, weight, bias, compute_dtype, tm_f,
                              _FUSED_VMEM_LIMIT)

    return _tiled_gcn(x, adj, weight, bias, compute_dtype)


def init_params(key, in_features, out_features, bias=True):
    """Matches GraphConvolution.reset_parameters: U(-stdv, stdv), stdv = 1/sqrt(out)."""
    stdv = 1.0 / math.sqrt(out_features)
    kw, kb = jax.random.split(key)
    weight = jax.random.uniform(
        kw, (in_features, out_features), dtype=jnp.float32, minval=-stdv, maxval=stdv)
    b = None
    if bias:
        b = jax.random.uniform(
            kb, (out_features,), dtype=jnp.float32, minval=-stdv, maxval=stdv)
    return weight, b


def _make_graph(key, n, density):
    a_raw = (jax.random.uniform(key, (n, n)) < density).astype(jnp.float32)
    adj = a_raw + a_raw.T + jnp.eye(n, dtype=jnp.float32)
    return adj / jnp.maximum(adj.sum(axis=1, keepdims=True), 1.0)


if __name__ == "__main__":
    key = jax.random.PRNGKey(0)
    k_x, k_adj, k_p, k_x2, k_adj2, k_p2 = jax.random.split(key, 6)

    # --- small graph -> fused single-kernel path -------------------------------
    N, F_IN, F_OUT = 64, 32, 128
    x = jax.random.normal(k_x, (N, F_IN), dtype=jnp.float32)
    adj = _make_graph(k_adj, N, 0.1)
    weight, bias = init_params(k_p, F_IN, F_OUT, bias=True)

    out = jax.block_until_ready(graph_convolution(x, adj, weight, bias))
    assert out.shape == (N, F_OUT) and out.dtype == jnp.float32

    # Matched-precision reference (bf16 operands, f32 accumulate).
    sup = jnp.dot(x.astype(jnp.bfloat16), weight.astype(jnp.bfloat16),
                  preferred_element_type=jnp.float32).astype(jnp.bfloat16)
    ref = jnp.dot(adj.astype(jnp.bfloat16), sup,
                  preferred_element_type=jnp.float32) + bias[None, :]
    assert jnp.allclose(out, ref, atol=1e-2, rtol=1e-2)
    # Full-f32 reference -- loose sanity check on bf16 quantization error.
    ref_f32 = adj @ (x @ weight) + bias[None, :]
    assert jnp.allclose(out, ref_f32, atol=5e-2, rtol=5e-2)

    # --- non-aligned graph, forced through the tiled two-matmul path -----------
    N2, F_IN2, F_OUT2 = 200, 48, 160
    x2 = jax.random.normal(k_x2, (N2, F_IN2), dtype=jnp.float32)
    adj2 = _make_graph(k_adj2, N2, 0.05)
    w2, b2 = init_params(k_p2, F_IN2, F_OUT2, bias=True)

    out2 = jax.block_until_ready(
        graph_convolution(x2, adj2, w2, b2, force_tiled=True))
    assert out2.shape == (N2, F_OUT2) and out2.dtype == jnp.float32
    sup2 = jnp.dot(x2.astype(jnp.bfloat16), w2.astype(jnp.bfloat16),
                   preferred_element_type=jnp.float32).astype(jnp.bfloat16)
    ref2 = jnp.dot(adj2.astype(jnp.bfloat16), sup2,
                   preferred_element_type=jnp.float32) + b2[None, :]
    assert jnp.allclose(out2, ref2, atol=1e-2, rtol=1e-2)

    # --- no-bias path ----------------------------------------------------------
    out_nb = jax.block_until_ready(graph_convolution(x, adj, weight, None))
    ref_nb = jnp.dot(adj.astype(jnp.bfloat16), sup,
                     preferred_element_type=jnp.float32)
    assert jnp.allclose(out_nb, ref_nb, atol=1e-2, rtol=1e-2)

    print("KERNEL_OK")
</pallas_src>

<mosaic_0001>
module attributes {stable_mosaic.version = 11 : i64} {
  func.func @kernel(%arg0: i32, %arg1: memref<64x32xf32, #tpu.memory_space<vmem>>, %arg2: memref<32x128xf32, #tpu.memory_space<vmem>>, %arg3: memref<64x64xf32, #tpu.memory_space<vmem>>, %arg4: memref<1x128xf32, #tpu.memory_space<vmem>>, %arg5: memref<64x128xf32, #tpu.memory_space<vmem>>, %arg6: memref<64x128xbf16, #tpu.memory_space<vmem>>) attributes {dimension_semantics = [#tpu.dimension_semantics<arbitrary>], iteration_bounds = array<i64: 1>, scalar_prefetch = 0 : i64, scratch_operands = 1 : i64, tpu.core_type = #tpu.core_type<tc>, window_params = [{pipeline_mode = #tpu.pipeline_mode<synchronous>, transform_indices = @transform_0, window_bounds = array<i64: 64, 32>}, {pipeline_mode = #tpu.pipeline_mode<synchronous>, transform_indices = @transform_1, window_bounds = array<i64: 32, 128>}, {transform_indices = @transform_2, window_bounds = array<i64: 64, 64>}, {pipeline_mode = #tpu.pipeline_mode<synchronous>, transform_indices = @transform_3, window_bounds = array<i64: 1, 128>}, {transform_indices = @transform_4, window_bounds = array<i64: 64, 128>}]} {
    %c0_i32 = arith.constant 0 : i32
    %0 = arith.cmpi eq, %arg0, %c0_i32 : i32
    %1 = arith.extui %0 : i1 to i32
    %c0_i32_0 = arith.constant 0 : i32
    %2 = arith.cmpi ne, %1, %c0_i32_0 : i32
    scf.if %2 {
      %c0_8 = arith.constant 0 : index
      %c0_9 = arith.constant 0 : index
      %11 = vector.load %arg1[%c0_8, %c0_9] : memref<64x32xf32, #tpu.memory_space<vmem>>, vector<64x32xf32>
      %12 = arith.truncf %11 : vector<64x32xf32> to vector<64x32xbf16>
      %c0_10 = arith.constant 0 : index
      %c0_11 = arith.constant 0 : index
      %13 = vector.load %arg2[%c0_10, %c0_11] : memref<32x128xf32, #tpu.memory_space<vmem>>, vector<32x128xf32>
      %14 = arith.truncf %13 : vector<32x128xf32> to vector<32x128xbf16>
      %cst_12 = arith.constant dense<0.000000e+00> : vector<64x128xf32>
      %15 = tpu.matmul %12, %14, %cst_12 {dimension_numbers = #tpu.dot_dimension_numbers<[1], [0], [0], [1], [0, 0, 1, 1], [], []>} : vector<64x32xbf16>, vector<32x128xbf16>, vector<64x128xf32> -> vector<64x128xf32>
      %16 = arith.truncf %15 : vector<64x128xf32> to vector<64x128xbf16>
      %c0_13 = arith.constant 0 : index
      %c0_14 = arith.constant 0 : index
      %17 = vector.load %arg6[%c0_13, %c0_14] : memref<64x128xbf16, #tpu.memory_space<vmem>>, vector<64x128xbf16>
      tpu.vector_store %arg6[%c0_13, %c0_14], %16 {strides = array<i32>} : memref<64x128xbf16, #tpu.memory_space<vmem>>, vector<64x128xbf16>,
    } else {
    }
    %c0 = arith.constant 0 : index
    %c0_1 = arith.constant 0 : index
    %3 = vector.load %arg3[%c0, %c0_1] : memref<64x64xf32, #tpu.memory_space<vmem>>, vector<64x64xf32>
    %4 = arith.truncf %3 : vector<64x64xf32> to vector<64x64xbf16>
    %c0_2 = arith.constant 0 : index
    %c0_3 = arith.constant 0 : index
    %5 = vector.load %arg6[%c0_2, %c0_3] : memref<64x128xbf16, #tpu.memory_space<vmem>>, vector<64x128xbf16>
    %cst = arith.constant dense<0.000000e+00> : vector<64x128xf32>
    %6 = tpu.matmul %4, %5, %cst {dimension_numbers = #tpu.dot_dimension_numbers<[1], [0], [0], [1], [0, 0, 1, 1], [], []>} : vector<64x64xbf16>, vector<64x128xbf16>, vector<64x128xf32> -> vector<64x128xf32>
    %c0_4 = arith.constant 0 : index
    %c0_5 = arith.constant 0 : index
    %7 = vector.load %arg4[%c0_4, %c0_5] : memref<1x128xf32, #tpu.memory_space<vmem>>, vector<1x128xf32>
    %8 = vector.broadcast %7 : vector<1x128xf32> to vector<64x128xf32>
    %9 = arith.addf %6, %8 : vector<64x128xf32>
    %c0_6 = arith.constant 0 : index
    %c0_7 = arith.constant 0 : index
    %10 = vector.load %arg5[%c0_6, %c0_7] : memref<64x128xf32, #tpu.memory_space<vmem>>, vector<64x128xf32>
    tpu.vector_store %arg5[%c0_6, %c0_7], %9 {strides = array<i32>} : memref<64x128xf32, #tpu.memory_space<vmem>>, vector<64x128xf32>,
    return
  }
  func.func @transform_0(%arg0: i32) -> (i32, i32) {
    %c0_i32 = arith.constant 0 : i32
    %c0_i32_0 = arith.constant 0 : i32
    %c0_i32_1 = arith.constant 0 : i32
    return %c0_i32, %c0_i32_0 : i32, i32
  }
  func.func @transform_1(%arg0: i32) -> (i32, i32) {
    %c0_i32 = arith.constant 0 : i32
    %c0_i32_0 = arith.constant 0 : i32
    %c0_i32_1 = arith.constant 0 : i32
    return %c0_i32, %c0_i32_0 : i32, i32
  }
  func.func @transform_2(%arg0: i32) -> (i32, i32) {
    %c0_i32 = arith.constant 0 : i32
    %c0_i32_0 = arith.constant 0 : i32
    return %arg0, %c0_i32 : i32, i32
  }
  func.func @transform_3(%arg0: i32) -> (i32, i32) {
    %c0_i32 = arith.constant 0 : i32
    %c0_i32_0 = arith.constant 0 : i32
    %c0_i32_1 = arith.constant 0 : i32
    return %c0_i32, %c0_i32_0 : i32, i32
  }
  func.func @transform_4(%arg0: i32) -> (i32, i32) {
    %c0_i32 = arith.constant 0 : i32
    %c0_i32_0 = arith.constant 0 : i32
    return %arg0, %c0_i32 : i32, i32
  }
}

</mosaic_0001>

<bundles_post_ra>
// kernel: tpu_custom_call.1
= control target key start
LH: loop header
LB: loop body
LE: loop exit
PB: predicated region body
PF: predicated region fallthrough
CT: control target
= control target key end

     0   :  { %vm41_vm0 = vcmask 261120   ;;  %s537_s0 = inlined_call_operand.vmem [shape: f32[64,32], index: 0, kind: input, shape index: {}]   ;;  %s538_s1 = inlined_call_operand.vmem [shape: f32[32,128], index: 1, kind: input, shape index: {}]   ;;  %s539_s2 = inlined_call_operand.vmem [shape: f32[64,64], index: 2, kind: input, shape index: {}]   ;;  %s540_s3 = inlined_call_operand.vmem [shape: f32[1,128], index: 3, kind: input, shape index: {}]   ;;  %s541_s4 = inlined_call_operand.hbm [shape: f32[64,128], index: 4, kind: output, shape index: {}]  }
   0x1   :  { %v37_v0 = vld [vmem:[%s538_s1 + $0x10] sm:$0xff]  ;;  %v38_v1 = vld [vmem:[%s538_s1 + $0x18] sm:$0xff]  ;;  %v35_v2 = vld [vmem:[%s538_s1] sm:$0xff] }
   0x2   :  { %v40_v3 = vpack.c.bf16 %v38_v1, %v37_v0  ;;  %v36_v4 = vld [vmem:[%s538_s1 + $0x8] sm:$0xff]  ;;  %v23_v5 = vld [vmem:[%s537_s0] sm:$0xff]  ;;  %v25_v9 = vld [vmem:[%s537_s0 + $0x10] sm:$0xff] }
   0x3   :  { %v24_v6 = vld [vmem:[%s537_s0 + $0x8] sm:$0xff]  ;;  %v39_v7 = vpack.c.bf16 %v36_v4, %v35_v2  ;;  %v26_v10 = vld [vmem:[%s537_s0 + $0x18] sm:$0xff] }
   0x4   :  { %v31_v8 = vpack.c.bf16 %v24_v6, %v23_v5  ;;  %378 = vmatprep.subr.bf16.mxu0 %v40_v3 }
   0x5   :  { %379 = vmatpush3.bf16.msra.mxu0 %v40_v3 }
   0x6   :  { %382 = vmatprep.mubr.msk.bf16.mxu0 %vm41_vm0, %v31_v8 }
   0x7   :  { %9 = vsyncpa [#allocation4], 0  ;;  %380 = vmatprep.subr.bf16.mxu0 %v39_v7  ;;  %v27_v11 = vld [vmem:[%s537_s0 + $0x20] sm:$0xff]  ;;  %v28_v12 = vld [vmem:[%s537_s0 + $0x28] sm:$0xff]  ;;  %v32_v13 = vpack.c.bf16 %v26_v10, %v25_v9  ;;  %vm210_vm1 = vcmask 523264  }
   0x8   :  { %v33_v14 = vpack.c.bf16 %v28_v12, %v27_v11  ;;  %v29_v15 = vld [vmem:[%s537_s0 + $0x30] sm:$0xff]  ;;  %v30_v16 = vld [vmem:[%s537_s0 + $0x38] sm:$0xff]  ;;  %v159_v18 = vld [vmem:[%s539_s2] sm:$0xff] }
   0x9   :  { %381 = vmatpush3.bf16.msra.mxu0 %v39_v7  ;;  %v34_v17 = vpack.c.bf16 %v30_v16, %v29_v15  ;;  %v160_v19 = vld [vmem:[%s539_s2 + $0x8] sm:$0xff]  ;;  %v161_v37 = vld [vmem:[%s539_s2 + $0x10] sm:$0xff]  ;;  %v162_v38 = vld [vmem:[%s539_s2 + $0x18] sm:$0xff] }
   0xa   :  { %v167_v20 = vpack.c.bf16 %v160_v19, %v159_v18  ;;  %v163_v39 = vld [vmem:[%s539_s2 + $0x20] sm:$0xff]  ;;  %v164_v40 = vld [vmem:[%s539_s2 + $0x28] sm:$0xff]  ;;  %v168_v41 = vpack.c.bf16 %v162_v38, %v161_v37  ;;  %v165_v43 = vld [vmem:[%s539_s2 + $0x30] sm:$0xff] }
   0xb   :  { %v169_v42 = vpack.c.bf16 %v164_v40, %v163_v39  ;;  %v166_v44 = vld [vmem:[%s539_s2 + $0x38] sm:$0xff]  ;;  %v324_v46 = vld [vmem:[%s540_s3] ss:$0 sm:$0xff]  ;;  %s435_s2 = smov [#allocation3]  }
   0xc   :  { %383 = vmatmul.mubr.msk.bf16.vlgmr.msra.gmra.mxu0 %vm41_vm0, %v32_v13  ;;  %398 = vmatprep.mubr.msk.bf16.mxu1 %vm210_vm1, %v167_v20  ;;  %v170_v45 = vpack.c.bf16 %v166_v44, %v165_v43  ;;  %s301_s1 = sshll.u32 %s435_s2, 4  ;;  %s302_s1 = int_to_ptr.vmem [resolvable:$true] %s301_s1 }
   0xd   :  { %386 = vmatprep.mubr.msk.bf16.mxu0 %vm41_vm0, %v33_v14  ;;  %s413_s3 = scalar_lea.vmem %s302_s1, 1024  ;;  %p418_p1 = scmp.lt.s32.totalorder %s302_s1, %s302_s1 }
   0xe   :  { %p414_p0 = scmp.ne.s32.totalorder %s302_s1, %s413_s3  ;;  %p419_p2 = scmp.lt.s32.totalorder %s413_s3, %s413_s3 }
  0x10   :  { %p420_p3 = por %p419_p2, %p418_p1 }
  0x12   :  { %p421_p4 = pnand %p420_p3, %p414_p0 }
  0x14   :  { %387 = vmatmul.mubr.msk.bf16.gmra.mxu0 %vm41_vm0, %v34_v17 }
  0xcc   :  { %v384_v21 = vpop.f32.mrf.mxu0 }
  0xce   :  { %v88_v22 = vpop.f32.mrf.mxu0 }
  0xd0   :  { %v385_v23 = vpop.f32.mrf.mxu0 }
  0xd1   :  { %v349_v24 = vpack.c.bf16 %v385_v23, %v384_v21 }
  0xd2   :  { %v91_v25 = vpop.f32.mrf.mxu0 }
  0xd3   :  { %361 = vst [vmem:[#allocation2 + $0x8] sm:$0xff] %v349_v24   ;;  %v344_v26 = vpack.c.bf16 %v91_v25, %v88_v22 }
  0xd4   :  { %v388_v27 = vpop.f32.mrf.mxu0 }
  0xd5   :  { %345 = vst [vmem:[#allocation2] sm:$0xff] %v344_v26  }
  0xd6   :  { %v104_v28 = vpop.f32.mrf.mxu0 }
  0xd8   :  { %v389_v29 = vpop.f32.mrf.mxu0 }
  0xd9   :  { %v359_v30 = vpack.c.bf16 %v389_v29, %v388_v27 }
  0xda   :  { %v107_v31 = vpop.f32.mrf.mxu0  ;;  %v411_v35 = vld [vmem:[#allocation2 + $0x8] sm:$0xff]  }
  0xdb   :  { %363 = vst [vmem:[#allocation2 + $0x18] sm:$0xff] %v359_v30   ;;  %v354_v32 = vpack.c.bf16 %v107_v31, %v104_v28 }
  0xdc   :  { %v412_v36 = vld [vmem:[#allocation2] sm:$0xff]  }
  0xdd   :  { %362 = vst [vmem:[#allocation2 + $0x10] sm:$0xff] %v354_v32  }
  0xe2   :  { %v409_v33 = vld [vmem:[#allocation2 + $0x18] sm:$0xff]  }
  0xe3   :  { %390 = vmatprep.subr.bf16.mxu1 %v409_v33 }
  0xe4   :  { %v410_v34 = vld [vmem:[#allocation2 + $0x10] sm:$0xff]   ;;  %391 = vmatpush3.bf16.msra.mxu1 %v409_v33 }
  0xe5   :  { %392 = vmatprep.subr.bf16.mxu1 %v410_v34 }
  0xe8   :  { %393 = vmatpush3.bf16.msra.mxu1 %v410_v34 }
  0xe9   :  { %394 = vmatprep.subr.bf16.mxu1 %v411_v35 }
  0xec   :  { %395 = vmatpush3.bf16.msra.mxu1 %v411_v35 }
  0xed   :  { %396 = vmatprep.subr.bf16.mxu1 %v412_v36 }
  0xf0   :  { %397 = vmatpush3.bf16.msra.mxu1 %v412_v36 }
  0xf3   :  { %399 = vmatmul.mubr.msk.bf16.vlgmr.msra.gmra.mxu1 %vm210_vm1, %v168_v41 }
  0xf4   :  { %402 = vmatprep.mubr.msk.bf16.mxu1 %vm210_vm1, %v169_v42 }
  0xfb   :  { %403 = vmatmul.mubr.msk.bf16.gmra.mxu1 %vm210_vm1, %v170_v45 }
 0x1b3   :  { %v400_v47 = vpop.f32.mrf.mxu1 }
 0x1b4   :  { %v266_v48 = vadd.f32 %v400_v47, %v324_v46 }
 0x1b5   :  { %v257_v49 = vpop.f32.mrf.mxu1 }
 0x1b6   :  { %290 = vst [vmem:[#allocation3 + $0x10] sm:$0xff] %v266_v48  ;;  %v258_v50 = vadd.f32 %v324_v46, %v257_v49 }
 0x1b7   :  { %v401_v51 = vpop.f32.mrf.mxu1 }
 0x1b8   :  { %288 = vst [vmem:[#allocation3] sm:$0xff] %v258_v50  ;;  %v269_v52 = vadd.f32 %v401_v51, %v324_v46 }
 0x1b9   :  { %v260_v53 = vpop.f32.mrf.mxu1 }
 0x1ba   :  { %291 = vst [vmem:[#allocation3 + $0x18] sm:$0xff] %v269_v52  ;;  %v261_v54 = vadd.f32 %v324_v46, %v260_v53 }
 0x1bb   :  { %v404_v55 = vpop.f32.mrf.mxu1 }
 0x1bc   :  { %289 = vst [vmem:[#allocation3 + $0x8] sm:$0xff] %v261_v54  ;;  %v282_v56 = vadd.f32 %v404_v55, %v324_v46 }
 0x1bd   :  { %v273_v57 = vpop.f32.mrf.mxu1 }
 0x1be   :  { %294 = vst [vmem:[#allocation3 + $0x30] sm:$0xff] %v282_v56  ;;  %v274_v58 = vadd.f32 %v324_v46, %v273_v57 }
 0x1bf   :  { %v405_v59 = vpop.f32.mrf.mxu1 }
 0x1c0   :  { %292 = vst [vmem:[#allocation3 + $0x20] sm:$0xff] %v274_v58  ;;  %v285_v60 = vadd.f32 %v405_v59, %v324_v46 }
 0x1c1   :  { %v276_v61 = vpop.f32.mrf.mxu1 }
 0x1c2   :  { %295 = vst [vmem:[#allocation3 + $0x38] sm:$0xff] %v285_v60  ;;  %v277_v62 = vadd.f32 %v324_v46, %v276_v61 }
 0x1c4   :  { %293 = vst [vmem:[#allocation3 + $0x28] sm:$0xff] %v277_v62 }
 0x1c5   :  { %424 = shalt.err (!%p421_p4)
}
 0x1c6   :  { %s436_s29 = smov 128   ;;  %s437_s30 = smov 8  }
 0x1c7   :  { %307 = dma.vmem_to_hbm [thread:$0]  %s302_s1, 1024, %s541_s4, [#allocation4], %s436_s29, %s436_s29, %s437_s30  }
 0x1c8   :  { %433 = dma.done.wait [#allocation4], 1024  }
 0x1c9   :  { %434 = vsyncadd [#allocation4], 4294966272 }
 0x1ca   :  { %311 = vsyncpa [#allocation4], 1 }

</bundles_post_ra>
